<compile_context>
chip_gen: v6e
topology: v6e:2x2x1
jax: 0.10.0
libtpu: 0.0.40
codegen_flags: <defaults>
</compile_context>

<pallas_src>
import functools
import math

import jax
import jax.numpy as jnp
from jax.experimental import pallas as pl
from jax.experimental.pallas import tpu as pltpu

GROUP = 4  # rt_group_size; reflection=False => group_size = 4


def build_group_weight_1x1(W, B):
    """Replicates GConv2d.get_weight() for kernel_size=1, reflection=False,
    first_layer=False, last_layer=False (the branches GMLP2d uses).

    W: (O, I, G) float32  (squeezed from (O, 1, I, G, 1, 1))
    B: (O,)      float32  (squeezed from (1, O, 1, 1))
    Returns (W_eff (O*G, I*G), b_eff (O*G,)).
    """
    # TODO(synk): reflection=True / Hermitian / spectral / first-or-last-layer
    # weight-expansion branches are not needed by GMLP2d defaults and are not
    # implemented here.
    O, I, G = W.shape
    k = jnp.arange(G)[:, None]
    g = jnp.arange(G)[None, :]
    idx = (g - k) % G                                   # (G_k, G_g)
    W_rolled = W[:, :, idx]                             # (O, I, G_k, G_g)
    W_eff = jnp.transpose(W_rolled, (0, 2, 1, 3)).reshape(O * G, I * G)
    b_eff = jnp.repeat(B, G)                            # repeat_interleave over out
    return W_eff, b_eff


def gmlp_kernel(x_ref, w1_ref, b1_ref, w2_ref, b2_ref, o_ref, *, compute_dtype):
    # x block: (1, Cin, T) with T a multiple of 128; channels on sublanes,
    # pixels on the 128-lane axis -> canonical rhs layout for both MXU dots,
    # no per-tile XLU transpose.  Weight/bias blocks are grid-invariant.
    x = x_ref[0].astype(w1_ref.dtype)                    # in-kernel cast (f32->bf16)
    h = jnp.dot(w1_ref[...], x, preferred_element_type=jnp.float32)   # (Cmid, T)
    h = h.astype(compute_dtype) + b1_ref[...].astype(compute_dtype)
    # tanh-approx GELU: transcendental runs on the EUP slot instead of a long
    # f32 erf polynomial on the VALU.  Intentional small deviation from
    # F.gelu's exact-erf default (~3e-3 abs max).
    h = jax.nn.gelu(h, approximate=True)
    h = h.astype(w2_ref.dtype)                           # bf16 operand for 2nd dot
    y = jnp.dot(w2_ref[...], h, preferred_element_type=jnp.float32)   # (Cout, T)
    y = y.astype(compute_dtype) + b2_ref[...].astype(compute_dtype)
    o_ref[0] = y.astype(o_ref.dtype)                     # lane-dense full-width vst


def _pick_compute_dtype():
    """bf16 elementwise math on v6e/v7x (bf16 VPU/EUP); f32 on v5e and older."""
    try:
        kind = jax.devices()[0].device_kind.lower()
    except Exception:
        return jnp.float32
    if any(tag in kind for tag in ("v2", "v3", "v4", "v5")):
        return jnp.float32
    return jnp.bfloat16


def _pick_spatial_tile(HW, N, tile_hw):
    """Largest multiple of 128 that divides HW (<= tile_hw), preferring a tile
    count giving >= 2 total (and even) programs so both v7x TCs get work."""
    if HW <= 128:
        return HW, 1                               # block == full array dim
    cap = min(tile_hw, HW)
    cap128 = (cap // 128) * 128
    divisors = [t for t in range(cap128, 127, -128) if HW % t == 0]
    if divisors:
        def score(t):
            total = N * (HW // t)
            return (total >= 2, total % 2 == 0, t)
        t = max(divisors, key=score)
        return t, HW // t
    # Fallback for ragged HW (rare for FNO-style grids): last tile is masked.
    t = ((cap + 127) // 128) * 128
    if t >= HW:
        return HW, 1
    return t, pl.cdiv(HW, t)


def gmlp2d_forward(x_nchw, w1_eff, b1_eff, w2_eff, b2_eff, *,
                   weight_dtype=jnp.bfloat16, out_dtype=jnp.bfloat16,
                   compute_dtype=None, tile_hw=8192):
    """x_nchw: (N, Cin, H, W) in its upstream dtype (f32 or bf16).
    Returns (N, Cout, H, W) in out_dtype (bf16 HBM writeback)."""
    N, Cin, H, W = x_nchw.shape
    Cmid = w1_eff.shape[0]
    Cout = w2_eff.shape[0]
    HW = H * W
    if compute_dtype is None:
        compute_dtype = _pick_compute_dtype()

    # NCHW-native: reshape only (free).  x keeps its upstream dtype; the bf16
    # cast for the MXU happens inside the kernel (no extra HBM convert pass).
    x3d = x_nchw.reshape(N, Cin, HW)

    t, s_tiles = _pick_spatial_tile(HW, N, tile_hw)

    w1 = w1_eff.astype(weight_dtype)                 # (Cmid, Cin)
    w2 = w2_eff.astype(weight_dtype)                 # (Cout, Cmid)
    b1 = b1_eff[:, None].astype(jnp.float32)         # (Cmid, 1) lane-broadcast
    b2 = b2_eff[:, None].astype(jnp.float32)         # (Cout, 1)

    x_isz = jnp.dtype(x3d.dtype).itemsize
    o_isz = jnp.dtype(out_dtype).itemsize
    w_isz = jnp.dtype(weight_dtype).itemsize
    cost = pl.CostEstimate(
        flops=2 * N * HW * (Cin * Cmid + Cmid * Cout),
        transcendentals=N * HW * Cmid,               # one tanh per hidden element
        bytes_accessed=(N * Cin * HW * x_isz + N * Cout * HW * o_isz
                        + (w1.size + w2.size) * w_isz + (b1.size + b2.size) * 4))

    kernel = functools.partial(gmlp_kernel, compute_dtype=compute_dtype)

    out3d = pl.pallas_call(
        kernel,
        out_shape=jax.ShapeDtypeStruct((N, Cout, HW), out_dtype),
        grid_spec=pltpu.PrefetchScalarGridSpec(
            num_scalar_prefetch=0,
            grid=(N, s_tiles),
            in_specs=[
                # NOTE: add pipeline_mode=pl.Buffered(3) on x only if profiling
                # shows exposed DMA (v5e, very large HW).
                pl.BlockSpec((1, Cin, t), lambda n, s: (n, 0, s)),
                pl.BlockSpec((Cmid, Cin), lambda n, s: (0, 0)),
                pl.BlockSpec((Cmid, 1), lambda n, s: (0, 0)),
                pl.BlockSpec((Cout, Cmid), lambda n, s: (0, 0)),
                pl.BlockSpec((Cout, 1), lambda n, s: (0, 0)),
            ],
            out_specs=pl.BlockSpec((1, Cout, t), lambda n, s: (n, 0, s)),
        ),
        compiler_params=pltpu.CompilerParams(
            dimension_semantics=("parallel", "parallel"),
            vmem_limit_bytes=32 * 1024 * 1024),      # footprint is a few MiB max
        cost_estimate=cost,
    )(x3d, w1, b1, w2, b2)

    return out3d.reshape(N, Cout, H, W)


def kaiming_uniform(key, shape, fan_in):
    # nn.init.kaiming_uniform_(..., a=sqrt(5)) => bound = sqrt(1/fan_in) * sqrt(3) * gain
    gain = math.sqrt(2.0 / (1.0 + 5.0))
    bound = gain * math.sqrt(3.0 / fan_in)
    return jax.random.uniform(key, shape, jnp.float32, -bound, bound)


if __name__ == "__main__":
    in_ch, mid_ch, out_ch = 4, 8, 4        # "base" channels; actual = base * GROUP
    N, H, W = 2, 16, 16

    key = jax.random.PRNGKey(0)
    k1, k2, k3, k4, kx = jax.random.split(key, 5)

    # mlp1: GConv2d(in_ch -> mid_ch): W (mid_ch, 1, in_ch, G, 1, 1), B (1, mid_ch, 1, 1)
    W1 = kaiming_uniform(k1, (mid_ch, in_ch, GROUP), fan_in=in_ch * GROUP)
    B1 = kaiming_uniform(k2, (mid_ch,), fan_in=mid_ch)
    # mlp2: GConv2d(mid_ch -> out_ch)
    W2 = kaiming_uniform(k3, (out_ch, mid_ch, GROUP), fan_in=mid_ch * GROUP)
    B2 = kaiming_uniform(k4, (out_ch,), fan_in=out_ch)

    W1_eff, b1_eff = build_group_weight_1x1(W1, B1)   # (mid_ch*G, in_ch*G)
    W2_eff, b2_eff = build_group_weight_1x1(W2, B2)   # (out_ch*G, mid_ch*G)

    # Input is NCHW with C = in_ch * group_size, f32 (as the PyTorch module).
    x = jax.random.normal(kx, (N, in_ch * GROUP, H, W), jnp.float32)

    compute_dtype = _pick_compute_dtype()
    out = gmlp2d_forward(x, W1_eff, b1_eff, W2_eff, b2_eff,
                         compute_dtype=compute_dtype)
    out = jax.block_until_ready(out)

    f32, bf16 = jnp.float32, jnp.bfloat16

    # (a) Reference mirroring the kernel's intentional quantization /
    #     approximation points (bf16 x/weights/hidden, compute_dtype
    #     elementwise math, tanh GELU).
    xq = x.astype(bf16).astype(f32)
    w1q = W1_eff.astype(bf16).astype(f32)
    w2q = W2_eff.astype(bf16).astype(f32)
    h = jnp.einsum("oc,nchw->nohw", w1q, xq)
    h = h.astype(compute_dtype) + b1_eff.astype(compute_dtype)[None, :, None, None]
    h = jax.nn.gelu(h, approximate=True).astype(bf16).astype(f32)
    y_mirror = jnp.einsum("oc,nchw->nohw", w2q, h)
    y_mirror = (y_mirror.astype(compute_dtype)
                + b2_eff.astype(compute_dtype)[None, :, None, None]).astype(f32)

    # (b) Exact-module reference (f32, exact-erf GELU) -- documents the total
    #     deviation from torch semantics introduced by bf16 + tanh GELU.
    h_e = jnp.einsum("oc,nchw->nohw", W1_eff, x) + b1_eff[None, :, None, None]
    h_e = jax.nn.gelu(h_e, approximate=False)
    y_exact = jnp.einsum("oc,nchw->nohw", W2_eff, h_e) + b2_eff[None, :, None, None]

    out_f32 = out.astype(f32)
    assert out.shape == (N, out_ch * GROUP, H, W)
    assert out.dtype == bf16
    assert jnp.allclose(out_f32, y_mirror, atol=2e-2, rtol=2e-2), (
        float(jnp.max(jnp.abs(out_f32 - y_mirror))))
    assert jnp.allclose(out_f32, y_exact, atol=6e-2, rtol=6e-2), (
        float(jnp.max(jnp.abs(out_f32 - y_exact))))
    print("KERNEL_OK")
</pallas_src>

<mosaic_0001>
module attributes {stable_mosaic.version = 11 : i64} {
  func.func @gmlp_kernel(%arg0: i32, %arg1: i32, %arg2: memref<1x16x256xf32, #tpu.memory_space<vmem>>, %arg3: memref<32x16xbf16, #tpu.memory_space<vmem>>, %arg4: memref<32x1xf32, #tpu.memory_space<vmem>>, %arg5: memref<16x32xbf16, #tpu.memory_space<vmem>>, %arg6: memref<16x1xf32, #tpu.memory_space<vmem>>, %arg7: memref<1x16x256xbf16, #tpu.memory_space<vmem>>) attributes {dimension_semantics = [#tpu.dimension_semantics<parallel>, #tpu.dimension_semantics<parallel>], iteration_bounds = array<i64: 2, 1>, scalar_prefetch = 0 : i64, scratch_operands = 0 : i64, tpu.core_type = #tpu.core_type<tc>, window_params = [{transform_indices = @transform_0, window_bounds = array<i64: 1, 16, 256>}, {pipeline_mode = #tpu.pipeline_mode<synchronous>, transform_indices = @transform_1, window_bounds = array<i64: 32, 16>}, {pipeline_mode = #tpu.pipeline_mode<synchronous>, transform_indices = @transform_2, window_bounds = array<i64: 32, 1>}, {pipeline_mode = #tpu.pipeline_mode<synchronous>, transform_indices = @transform_3, window_bounds = array<i64: 16, 32>}, {pipeline_mode = #tpu.pipeline_mode<synchronous>, transform_indices = @transform_4, window_bounds = array<i64: 16, 1>}, {transform_indices = @transform_5, window_bounds = array<i64: 1, 16, 256>}]} {
    %c0 = arith.constant 0 : index
    %c0_0 = arith.constant 0 : index
    %c0_1 = arith.constant 0 : index
    %0 = vector.load %arg2[%c0, %c0_0, %c0_1] : memref<1x16x256xf32, #tpu.memory_space<vmem>>, vector<1x16x256xf32>
    %1 = vector.shape_cast %0 : vector<1x16x256xf32> to vector<16x256xf32>
    %2 = arith.truncf %1 : vector<16x256xf32> to vector<16x256xbf16>
    %c0_2 = arith.constant 0 : index
    %c0_3 = arith.constant 0 : index
    %3 = vector.load %arg3[%c0_2, %c0_3] : memref<32x16xbf16, #tpu.memory_space<vmem>>, vector<32x16xbf16>
    %cst = arith.constant dense<0.000000e+00> : vector<32x256xf32>
    %4 = tpu.matmul %3, %2, %cst {dimension_numbers = #tpu.dot_dimension_numbers<[1], [0], [0], [1], [0, 0, 1, 1], [], []>} : vector<32x16xbf16>, vector<16x256xbf16>, vector<32x256xf32> -> vector<32x256xf32>
    %5 = arith.truncf %4 : vector<32x256xf32> to vector<32x256xbf16>
    %c0_4 = arith.constant 0 : index
    %c0_5 = arith.constant 0 : index
    %6 = vector.load %arg4[%c0_4, %c0_5] : memref<32x1xf32, #tpu.memory_space<vmem>>, vector<32x1xf32>
    %7 = arith.truncf %6 : vector<32x1xf32> to vector<32x1xbf16>
    %8 = vector.broadcast %7 : vector<32x1xbf16> to vector<32x256xbf16>
    %9 = arith.addf %5, %8 : vector<32x256xbf16>
    %10 = arith.mulf %9, %9 : vector<32x256xbf16>
    %11 = arith.mulf %9, %10 : vector<32x256xbf16>
    %cst_6 = arith.constant 4.467770e-02 : bf16
    %12 = vector.broadcast %cst_6 : bf16 to vector<32x256xbf16>
    %13 = arith.mulf %12, %11 : vector<32x256xbf16>
    %14 = arith.addf %9, %13 : vector<32x256xbf16>
    %cst_7 = arith.constant 7.968750e-01 : bf16
    %15 = vector.broadcast %cst_7 : bf16 to vector<32x256xbf16>
    %16 = arith.mulf %15, %14 : vector<32x256xbf16>
    %17 = math.tanh %16 : vector<32x256xbf16>
    %cst_8 = arith.constant 1.000000e+00 : bf16
    %18 = vector.broadcast %cst_8 : bf16 to vector<32x256xbf16>
    %19 = arith.addf %18, %17 : vector<32x256xbf16>
    %cst_9 = arith.constant 5.000000e-01 : bf16
    %20 = vector.broadcast %cst_9 : bf16 to vector<32x256xbf16>
    %21 = arith.mulf %20, %19 : vector<32x256xbf16>
    %22 = arith.mulf %9, %21 : vector<32x256xbf16>
    %c0_10 = arith.constant 0 : index
    %c0_11 = arith.constant 0 : index
    %23 = vector.load %arg5[%c0_10, %c0_11] : memref<16x32xbf16, #tpu.memory_space<vmem>>, vector<16x32xbf16>
    %cst_12 = arith.constant dense<0.000000e+00> : vector<16x256xf32>
    %24 = tpu.matmul %23, %22, %cst_12 {dimension_numbers = #tpu.dot_dimension_numbers<[1], [0], [0], [1], [0, 0, 1, 1], [], []>} : vector<16x32xbf16>, vector<32x256xbf16>, vector<16x256xf32> -> vector<16x256xf32>
    %25 = arith.truncf %24 : vector<16x256xf32> to vector<16x256xbf16>
    %c0_13 = arith.constant 0 : index
    %c0_14 = arith.constant 0 : index
    %26 = vector.load %arg6[%c0_13, %c0_14] : memref<16x1xf32, #tpu.memory_space<vmem>>, vector<16x1xf32>
    %27 = arith.truncf %26 : vector<16x1xf32> to vector<16x1xbf16>
    %28 = vector.broadcast %27 : vector<16x1xbf16> to vector<16x256xbf16>
    %29 = arith.addf %25, %28 : vector<16x256xbf16>
    %c0_15 = arith.constant 0 : index
    %c0_16 = arith.constant 0 : index
    %c0_17 = arith.constant 0 : index
    %30 = vector.load %arg7[%c0_15, %c0_16, %c0_17] : memref<1x16x256xbf16, #tpu.memory_space<vmem>>, vector<1x16x256xbf16>
    %31 = vector.shape_cast %30 : vector<1x16x256xbf16> to vector<16x256xbf16>
    %32 = vector.shape_cast %29 : vector<16x256xbf16> to vector<1x16x256xbf16>
    tpu.vector_store %arg7[%c0_15, %c0_16, %c0_17], %32 {strides = array<i32>} : memref<1x16x256xbf16, #tpu.memory_space<vmem>>, vector<1x16x256xbf16>,
    return
  }
  func.func @transform_0(%arg0: i32, %arg1: i32) -> (i32, i32, i32) {
    %c0_i32 = arith.constant 0 : i32
    %c0_i32_0 = arith.constant 0 : i32
    return %arg0, %c0_i32, %arg1 : i32, i32, i32
  }
  func.func @transform_1(%arg0: i32, %arg1: i32) -> (i32, i32) {
    %c0_i32 = arith.constant 0 : i32
    %c0_i32_0 = arith.constant 0 : i32
    %c0_i32_1 = arith.constant 0 : i32
    return %c0_i32, %c0_i32_0 : i32, i32
  }
  func.func @transform_2(%arg0: i32, %arg1: i32) -> (i32, i32) {
    %c0_i32 = arith.constant 0 : i32
    %c0_i32_0 = arith.constant 0 : i32
    %c0_i32_1 = arith.constant 0 : i32
    return %c0_i32, %c0_i32_0 : i32, i32
  }
  func.func @transform_3(%arg0: i32, %arg1: i32) -> (i32, i32) {
    %c0_i32 = arith.constant 0 : i32
    %c0_i32_0 = arith.constant 0 : i32
    %c0_i32_1 = arith.constant 0 : i32
    return %c0_i32, %c0_i32_0 : i32, i32
  }
  func.func @transform_4(%arg0: i32, %arg1: i32) -> (i32, i32) {
    %c0_i32 = arith.constant 0 : i32
    %c0_i32_0 = arith.constant 0 : i32
    %c0_i32_1 = arith.constant 0 : i32
    return %c0_i32, %c0_i32_0 : i32, i32
  }
  func.func @transform_5(%arg0: i32, %arg1: i32) -> (i32, i32, i32) {
    %c0_i32 = arith.constant 0 : i32
    %c0_i32_0 = arith.constant 0 : i32
    return %arg0, %c0_i32, %arg1 : i32, i32, i32
  }
}

</mosaic_0001>

<bundles_post_ra>
// kernel: tpu_custom_call.1
= control target key start
LH: loop header
LB: loop body
LE: loop exit
PB: predicated region body
PF: predicated region fallthrough
CT: control target
= control target key end

     0   :  { %10 = vsyncpa [#allocation3], 0  ;;  %s919_s0 = inlined_call_operand.vmem [shape: f32[2,16,256], index: 0, kind: input, shape index: {}]   ;;  %s920_s1 = inlined_call_operand.vmem [shape: bf16[32,16], index: 1, kind: input, shape index: {}]   ;;  %s921_s2 = inlined_call_operand.vmem [shape: f32[32,1], index: 2, kind: input, shape index: {}]   ;;  %s922_s3 = inlined_call_operand.vmem [shape: bf16[16,32], index: 3, kind: input, shape index: {}]   ;;  %s923_s4 = inlined_call_operand.vmem [shape: f32[16,1], index: 4, kind: input, shape index: {}]   ;;  %s924_s5 = inlined_call_operand.hbm [shape: bf16[2,16,256], index: 5, kind: output, shape index: {}]  }
   0x1   :  { %12 = vsyncpa [#allocation3 + $0x1], 0  ;;  %s778_s18 = smov 0   ;;  %s780_s19 = smov 0  }
   0x2   :  { %s782_s20 = smov 0   ;;  %s784_s21 = smov 0  }
   0x3   :  { %s786_s22 = smov 0   ;;  %s788_s23 = smov 0  }
   0x4 LB: > { %s572_s24 = sadd.s32 4294967295, %s742_s23   ;;  %s573_s25 = sadd.s32 4294967294, %s742_s23   ;;  %s742_s23 = sphi %s788_s23, %s18_s23   ;;  %s738_s22 = sphi %s786_s22, %s931_s22   ;;  %s734_s21 = sphi %s784_s21, %s930_s21   ;;  %s730_s20 = sphi %s782_s20, %s929_s20   ;;  %s726_s19 = sphi %s780_s19, %s928_s19   ;;  %s722_s18 = sphi %s778_s18, %s927_s18  }
   0x5   : > { %s30_s26 = sadd.s32 1, %s738_s22  ;;  %s151_s27 = sadd.s32 1, %s730_s20 }
   0x6   : > { %p32_p0 = scmp.ge.s32.totalorder %s30_s26, 2  ;;  %p161_p1 = scmp.ne.s32.totalorder %s730_s20, %s726_s19 }
   0x7   : > { %p162_p2 = scmp.eq.s32.totalorder %s572_s24, 1  ;;  %p167_p3 = scmp.ne.s32.totalorder %s726_s19, %s722_s18 }
   0x8   : > { %s933_s26 = smov (%p32_p0, %s30_s26), 0  ;;  %p168_p5 = scmp.eq.s32.totalorder %s573_s25, 1 }
   0x9   : > { %p818_p4 = por %p162_p2, %p161_p1  ;;  %s146_s29 = ssub.s32 %s738_s22, %s933_s26 }
   0xa   : > { %p576_p6 = scmp.ge.s32.totalorder %s742_s23, 1  ;;  %p149_p7 = scmp.eq.s32.totalorder %s146_s29, 0 }
   0xb   : > { %p825_p8 = por %p168_p5, %p167_p3  ;;  %p211_p9 = scmp.lt.s32.totalorder %s742_s23, 3 }
   0xc   : > { %s831_s6 = scalar_select %p149_p7, %s730_s20, %s151_s27  }
   0xd   : > { %p212_p10 = pnand %p576_p6, %p211_p9 }
   0xe   : > { %p244_p11 = scmp.lt.s32.totalorder (!%p212_p10), %s734_s21, 1  ;;  %s240_s15 = sand.u32 (!%p212_p10), 1, %s726_s19  }
   0xf   : > { %215 = sbr.rel (%p212_p10) target bundleno = 500 (0x1f4), region = 40  ;;  %s874_s8 = scalar_lea.sflag (!%p212_p10), [#allocation3], %s240_s15 }
  0x14   : > { %v744_v0 = vmov 0   ;;  %s245_s7 = scalar_select %p244_p11, %s734_s21, 1  ;;  %v345_v1 = vld [vmem:[%s921_s2 + $0x10] sm:$0xff]  ;;  %v346_v2 = vld [vmem:[%s921_s2 + $0x18] sm:$0xff]  ;;  %v343_v4 = vld [vmem:[%s921_s2] sm:$0xff]  ;;  %vm279_vm0 = vcmask 130048  }
  0x15   : > { %318 = vmatprep.mubr.bf16.mxu0 %v744_v0  ;;  %653 = vset.pattern.permute.xlu0 %v744_v0  ;;  %v348_v3 = vpack.c.bf16 %v346_v2, %v345_v1  ;;  %v344_v5 = vld [vmem:[%s921_s2 + $0x8] sm:$0xff]  ;;  %v655_v13 = vld [vmem:[%s920_s1] sm:$0xff]   ;;  %vm406_vm1 = vcmask 261120  }
  0x16   : > { %442 = vmatprep.mubr.bf16.mxu1 %v744_v0  ;;  %654 = vset.pattern.permute.xlu1 %v744_v0  ;;  %s593_s16 = sshll.u32 %s245_s7, 5  ;;  %v347_v6 = vpack.c.bf16 %v344_v5, %v343_v4  ;;  %v656_v14 = vld [vmem:[%s920_s1 + $0x8] sm:$0xff]   ;;  %v455_v15 = vld [vmem:[%s923_s4] sm:$0xff] }
  0x17   : > { %s251_s25 = scalar_lea.vmem %s919_s0, %s593_s16  ;;  %356 = vperm.xlu0 %653, %v348_v3   ;;  %v456_v16 = vld [vmem:[%s923_s4 + $0x8] sm:$0xff]  ;;  %s577_s16 = sshll.u32 %s240_s15, 4 }
  0x18   : > { %v260_v7 = vld [vmem:[%s251_s25 + $0x8] sm:$0xff]  ;;  %v262_v8 = vld [vmem:[%s251_s25 + $0x18] sm:$0xff]  ;;  %v259_v9 = vld [vmem:[%s251_s25] sm:$0xff]  ;;  %v457_v17 = vpack.c.bf16 %v456_v16, %v455_v15  ;;  %s242_s17 = scalar_lea.vmem [#allocation2], %s577_s16 }
  0x19   : > { %v264_v10 = vpack.c.bf16 %v262_v8, %v260_v7  ;;  %v261_v11 = vld [vmem:[%s251_s25 + $0x10] sm:$0xff]  ;;  %v657_v8 = vld [vmem:[%s922_s3] sm:$0xff]   ;;  %s493_s24 = sshll.u32 %s242_s17, 4  ;;  %s594_s25 = sshll.u32 %s734_s21, 8  ;;  %s867_s24 = int_to_ptr.vmem [resolvable:$true] %s493_s24 }
  0x1a   : > { %v263_v12 = vpack.c.bf16 %v261_v11, %v259_v9  ;;  %460 = vperm.xlu1 %654, %v457_v17   ;;  %s872_s7 = scalar_lea.hbm %s924_s5, %s594_s25  ;;  %s666_s9 = scalar_lea.vmem %s867_s24, 256 }
  0x1b   : > { %300 = vmatprep.subr.bf16.mxu0 %v264_v10  ;;  %351 = vperm.xlu0 %653, %v347_v6   ;;  %p667_p12 = scmp.ne.s32.totalorder %s867_s24, %s666_s9  ;;  %s745_s21 = smov [#allocation2]  }
  0x1c   : > { %301 = vmatpush1.bf16.msra.mxu0 %v263_v12  ;;  %s670_s10 = sshll.u32 %s745_s21, 4  ;;  %s671_s10 = int_to_ptr.vmem [resolvable:$false] %s670_s10 }
  0x1d   : > { %p668_p13 = pnand %p667_p12, %p818_p4  ;;  %s672_s11 = scalar_lea.vmem %s671_s10, 512 }
  0x1e   : > { %p673_p1 = scmp.lt.s32.totalorder %s867_s24, %s671_s10  ;;  %p674_p2 = scmp.lt.s32.totalorder %s672_s11, %s666_s9 }
  0x1f   : > { %582 = vmatmul.mubr.msk.bf16.vlgmr.msra.gmra.mxu0 %vm279_vm0, %v655_v13  ;;  %p669_p0 = pneg %p668_p13 }
  0x20   : > { %328 = vmatprep.mubr.bf16.mxu0 %v744_v0  ;;  %p675_p3 = por %p674_p2, %p673_p1 }
  0x22   : > { %p676_p5 = pnand %p675_p3, %p669_p0 }
  0x27   : > { %583 = vmatmul.mubr.msk.bf16.gmra.mxu0 %vm279_vm0, %v656_v14 }
  0x92   : > { %v357_v18 = vpop.permute.xlu0 %356 }
  0x95   : > { %v461_v13 = vpop.permute.xlu1 %460 }
  0x96   : > { %v352_v22 = vpop.permute.xlu0 %351 }
  0xdf   : > { %v320_v19 = vpop.f32.mrf.mxu0 }
  0xe1   : > { %v322_v20 = vpop.f32.mrf.mxu0 }
  0xe3   : > { %v324_v21 = vpop.f32.mrf.mxu0 }
  0xe4   : > { %v339_v23 = vpack.c.bf16 %v324_v21, %v320_v19 }
  0xe5   : > { %v326_v24 = vpop.f32.mrf.mxu0 }
  0xe6   : > { %v359_v25 = vadd.bf16 %v352_v22, %v339_v23  ;;  %v340_v26 = vpack.c.bf16 %v326_v24, %v322_v20 }
  0xe7   : > { %v330_v27 = vpop.f32.mrf.mxu0 }
  0xe8   : > { %v363_v28 = vmul.bf16 %v359_v25, %v359_v25  ;;  %v360_v29 = vadd.bf16 %v352_v22, %v340_v26 }
  0xe9   : > { %v332_v30 = vpop.f32.mrf.mxu0 }
  0xea   : > { %v364_v31 = vmul.bf16 %v360_v29, %v360_v29  ;;  %v367_v32 = vmul.bf16 %v363_v28, %v359_v25 }
  0xeb   : > { %v334_v33 = vpop.f32.mrf.mxu0 }
  0xec   : > { %v368_v34 = vmul.bf16 %v364_v31, %v360_v29  ;;  %v341_v35 = vpack.c.bf16 %v334_v33, %v330_v27  ;;  %v371_v40 = vmul.bf16 1027030327, %v367_v32 }
  0xed   : > { %v336_v36 = vpop.f32.mrf.mxu0 }
  0xee   : > { %v372_v37 = vmul.bf16 1027030327, %v368_v34  ;;  %v361_v38 = vadd.bf16 %v357_v18, %v341_v35  ;;  %v342_v39 = vpack.c.bf16 %v336_v36, %v332_v30  ;;  %v375_v46 = vadd.bf16 %v371_v40, %v359_v25 }
  0xf0   : > { %v376_v41 = vadd.bf16 %v372_v37, %v360_v29  ;;  %v365_v42 = vmul.bf16 %v361_v38, %v361_v38  ;;  %v362_v43 = vadd.bf16 %v357_v18, %v342_v39  ;;  %v379_v52 = vmul.bf16 1061961548, %v375_v46 }
  0xf2   : > { %v369_v44 = vmul.bf16 %v365_v42, %v361_v38  ;;  %v366_v45 = vmul.bf16 %v362_v43, %v362_v43  ;;  %v380_v49 = vmul.bf16 1061961548, %v376_v41 }
  0xf4   : > { %v370_v47 = vmul.bf16 %v366_v45, %v362_v43  ;;  %v373_v48 = vmul.bf16 1027030327, %v369_v44  ;;  %658 = vtanh.bf16 %v380_v49 }
  0xf6   : > { %v374_v50 = vmul.bf16 1027030327, %v370_v47  ;;  %v377_v51 = vadd.bf16 %v373_v48, %v361_v38 }
  0xf8   : > { %v378_v53 = vadd.bf16 %v374_v50, %v362_v43  ;;  %v381_v54 = vmul.bf16 1061961548, %v377_v51 }
  0xfa   : > { %v382_v55 = vmul.bf16 1061961548, %v378_v53  ;;  %660 = vtanh.bf16 %v381_v54 }
  0xfb   : > { %662 = vtanh.bf16 %v379_v52 }
  0xfc   : > { %664 = vtanh.bf16 %v382_v55 }
 0x102   : > { %v659_v56 = vpop.eup %658 }
 0x103   : > { %v388_v60 = vadd.bf16 1065369472, %v659_v56 }
 0x105   : > { %v392_v2 = vmul.bf16 1056980736, %v388_v60 }
 0x107   : > { %v396_v6 = vmul.bf16 %v392_v2, %v360_v29 }
 0x108   : > { %v661_v57 = vpop.eup %660 }
 0x109   : > { %v663_v58 = vpop.eup %662  ;;  %v389_v59 = vadd.bf16 1065369472, %v661_v57 }
 0x10a   : > { %v665_v61 = vpop.eup %664  ;;  %v387_v0 = vadd.bf16 1065369472, %v663_v58 }
 0x10b   : > { %v390_v62 = vadd.bf16 1065369472, %v665_v61  ;;  %v393_v63 = vmul.bf16 1056980736, %v389_v59 }
 0x10c   : > { %v391_v5 = vmul.bf16 1056980736, %v387_v0 }
 0x10d   : > { %v394_v1 = vmul.bf16 1056980736, %v390_v62  ;;  %v397_v4 = vmul.bf16 %v393_v63, %v361_v38 }
 0x10e   : > { %v395_v7 = vmul.bf16 %v391_v5, %v359_v25 }
 0x10f   : > { %v398_v3 = vmul.bf16 %v394_v1, %v362_v43 }
 0x111   : > { %422 = vmatprep.subr.bf16.mxu1 %v398_v3 }
 0x112   : > { %423 = vmatpush1.bf16.msra.mxu1 %v397_v4 }
 0x113   : > { %424 = vmatprep.subr.bf16.mxu1 %v396_v6 }
 0x116   : > { %425 = vmatpush1.bf16.msra.mxu1 %v395_v7 }
 0x119   : > { %585 = vmatmul.mubr.msk.bf16.vlgmr.msra.gmra.mxu1 %vm406_vm1, %v657_v8 }
 0x1d9   : > { %v444_v9 = vpop.f32.mrf.mxu1 }
 0x1db   : > { %v446_v10 = vpop.f32.mrf.mxu1 }
 0x1dd   : > { %v448_v11 = vpop.f32.mrf.mxu1 }
 0x1de   : > { %v453_v12 = vpack.c.bf16 %v448_v11, %v444_v9 }
 0x1df   : > { %v450_v14 = vpop.f32.mrf.mxu1 }
 0x1e0   : > { %v454_v15 = vpack.c.bf16 %v450_v14, %v446_v10  ;;  %v463_v16 = vadd.bf16 %v461_v13, %v453_v12 }
 0x1e2   : > { %v464_v17 = vadd.bf16 %v461_v13, %v454_v15 }
 0x1e4   : > { %v586_v18 = vcombine.low %v463_v16, %v464_v17  ;;  %v587_v19 = vcombine.high %v463_v16, %v464_v17 }
 0x1e6   : > { %475 = vst [vmem:[%s242_s17] sm:$0xff] %v586_v18  ;;  %476 = vst [vmem:[%s242_s17 + $0x8] sm:$0xff] %v587_v19 }
 0x1e7   : > { %679 = shalt.err (!%p676_p5)
}
 0x1e8   : > { %s680_s12 = scalar_lea.hbm %s872_s7, 256  ;;  %s684_s15 = scalar_lea.hbm %s924_s5, 512 }
 0x1e9   : > { %p681_p6 = scmp.ne.s32.totalorder %s872_s7, %s680_s12  ;;  %p685_p10 = scmp.lt.s32.totalorder %s872_s7, %s924_s5 }
 0x1ea   : > { %p686_p11 = scmp.lt.s32.totalorder %s684_s15, %s680_s12 }
 0x1eb   : > { %p682_p7 = pnand %p681_p6, %p818_p4 }
 0x1ec   : > { %p687_p12 = por %p686_p11, %p685_p10 }
 0x1ed   : > { %p683_p9 = pneg %p682_p7 }
 0x1ef   : > { %p688_p13 = pnand %p687_p12, %p683_p9 }
 0x1f1   : > { %691 = shalt.err (!%p688_p13)
}
 0x1f2   : > { %s746_s25 = smov 128   ;;  %s747_s27 = smov 8  }
 0x1f3   : > { %595 = dma.vmem_to_hbm [thread:$0]  (%p818_p4), %s867_s24, 256, %s872_s7, %s874_s8, %s746_s25, %s746_s25, %s747_s27  }
 0x1f4 PF: > { %p601_p0 = scmp.ge.s32.totalorder %s742_s23, 2  ;;  %s508_s29 = sand.u32 1, %s722_s18  }
 0x1f5   : > { %s509_s9 = scalar_lea.sflag [#allocation3], %s508_s29 }
 0x1f6   : > { %p598_p1 = pnand %p601_p0, %p825_p8 }
 0x1f8   : > { %p599_p2 = pneg %p598_p1 }
 0x1fa   : > { %717 = dma.done.wait (%p599_p2), %s509_s9, 256  }
 0x1fb   : > { %719 = vsyncadd (%p599_p2), %s509_s9, 4294967040  ;;  %s18_s23 = sadd.s32 1, %s742_s23   ;;  %s927_s18 = smov %s726_s19 }
 0x1fc   : > { %p15_p3 = scmp.ge.s32.totalorder %s18_s23, 4   ;;  %s928_s19 = smov %s730_s20 }
 0x1fd   : > { %s929_s20 = smov %s831_s6  ;;  %s930_s21 = smov %s738_s22 }
 0x1fe   : > { %s931_s22 = smov %s933_s26  ;;  %17 = sbr.rel (!%p15_p3) target bundleno = 4 (0x4), region = 75 }
 0x203   :  { %514 = vsyncpa [#allocation3], 1 }
 0x204   :  { %516 = vsyncpa [#allocation3 + $0x1], 1 }

</bundles_post_ra>
